<compile_context>
chip_gen: v6e
topology: v6e:2x2x1
jax: 0.10.0
libtpu: 0.0.40
codegen_flags: <defaults>
</compile_context>

<pallas_src>
import jax
import jax.numpy as jnp
from jax.experimental import pallas as pl
from jax.experimental.pallas import tpu as pltpu


def _round_up(n: int, m: int) -> int:
    return (n + m - 1) // m * m


def linear_kernel(w_ref, b_ref, x_ref, o_ref):
    # w_ref: (IN,)        SMEM  -- weights read as scalars
    # b_ref: (1,)         SMEM  -- scalar bias
    # x_ref: (IN, G, 128) VMEM  -- feature-major; batch dense on (sublane, lane)
    # o_ref: (G, 128)     VMEM  -- lane-dense batch output
    in_features = x_ref.shape[0]
    acc = jnp.full(o_ref.shape, b_ref[0], dtype=jnp.float32)
    for k in range(in_features):          # static unroll, IN = 10
        acc = acc + w_ref[k] * x_ref[k]    # scalar (SMEM) * dense (G,128) VPU FMA
    o_ref[...] = acc.astype(o_ref.dtype)


def simple_model_forward(x, weight, bias, *, tile_rows=65536):
    """x: (B, 10), weight: (1, 10), bias: (1,) -> (B, 1)."""
    B, IN = x.shape
    OUT = weight.shape[0]
    assert OUT == 1 and weight.shape[1] == IN and bias.shape == (OUT,)

    # Pad batch only to a multiple of 128 (lane width); this pad fuses into the
    # single feature-major relayout pass below (no extra full-array copy).
    b_pad = _round_up(max(B, 1), 128)
    n_groups = b_pad // 128

    # (B, IN) -> (IN, b_pad) -> (IN, n_groups, 128): one copy pass over x.
    xt = jnp.pad(x.astype(jnp.float32).T, ((0, 0), (0, b_pad - B)))
    xr = xt.reshape(IN, n_groups, 128)

    # Tile selection: G = row-groups (of 128 rows) per grid step.
    max_g = max(8, tile_rows // 128)
    if n_groups <= max_g:
        g = n_groups                      # single tile; G == full dim is legal
        num_tiles = 1
    else:
        # Even tile count >= 2 so v7x's two TensorCores split the parallel axis.
        num_tiles = _round_up(pl.cdiv(n_groups, max_g), 2)
        g = _round_up(pl.cdiv(n_groups, num_tiles), 8)   # sublane-aligned block
        num_tiles = pl.cdiv(n_groups, g)  # ragged last block is clamped by Pallas

    out = pl.pallas_call(
        linear_kernel,
        out_shape=jax.ShapeDtypeStruct((n_groups, 128), jnp.float32),
        grid=(num_tiles,),
        in_specs=[
            pl.BlockSpec(memory_space=pltpu.MemorySpace.SMEM),   # weight (IN,)
            pl.BlockSpec(memory_space=pltpu.MemorySpace.SMEM),   # bias (1,)
            pl.BlockSpec((IN, g, 128), lambda i: (0, i, 0)),     # x block
        ],
        out_specs=pl.BlockSpec((g, 128), lambda i: (i, 0)),
        compiler_params=pltpu.CompilerParams(
            dimension_semantics=("parallel",),
            vmem_limit_bytes=32 * 1024 * 1024,
        ),
    )(weight.reshape(IN).astype(jnp.float32), bias.astype(jnp.float32), xr)

    # (n_groups, 128) is batch-major row-major -> free reshape, then drop pad.
    return out.reshape(b_pad, 1)[:B].astype(x.dtype)


if __name__ == "__main__":
    key = jax.random.PRNGKey(0)
    kx, kw, kb = jax.random.split(key, 3)

    # Deterministic init mimicking nn.Linear(10, 1) shapes / scale.
    bound = 1.0 / jnp.sqrt(10.0)
    weight = jax.random.uniform(kw, (1, 10), jnp.float32, -bound, bound)
    bias = jax.random.uniform(kb, (1,), jnp.float32, -bound, bound)

    fwd = jax.jit(simple_model_forward, static_argnames=("tile_rows",))

    # Small demo shape consistent with nn.Linear(10, 1): single-tile path.
    B = 8
    x = jax.random.normal(kx, (B, 10), dtype=jnp.float32)
    y = jax.block_until_ready(fwd(x, weight, bias))
    y_ref = x @ weight.T + bias
    assert y.shape == (B, 1), y.shape
    assert jnp.allclose(y, y_ref, atol=1e-5, rtol=1e-5), "mismatch (B=8)"

    # Multi-tile 'parallel' grid with a ragged last block (small tile override).
    B2 = 2500
    x2 = jax.random.normal(jax.random.PRNGKey(1), (B2, 10), dtype=jnp.float32)
    y2 = jax.block_until_ready(fwd(x2, weight, bias, tile_rows=1024))
    y2_ref = x2 @ weight.T + bias
    assert y2.shape == (B2, 1), y2.shape
    assert jnp.allclose(y2, y2_ref, atol=1e-5, rtol=1e-5), "mismatch (B=2500)"

    print("KERNEL_OK")
</pallas_src>

<mosaic_0001>
module attributes {stable_mosaic.version = 11 : i64} {
  func.func @linear_kernel(%arg0: i32, %arg1: memref<10xf32, #tpu.memory_space<smem>>, %arg2: memref<1xf32, #tpu.memory_space<smem>>, %arg3: memref<10x1x128xf32, #tpu.memory_space<vmem>>, %arg4: memref<1x128xf32, #tpu.memory_space<vmem>>) attributes {dimension_semantics = [#tpu.dimension_semantics<parallel>], iteration_bounds = array<i64: 1>, scalar_prefetch = 0 : i64, scratch_operands = 0 : i64, tpu.core_type = #tpu.core_type<tc>, window_params = [{transform_indices = @transform_0, window_bounds = array<i64: 10>}, {transform_indices = @transform_1, window_bounds = array<i64: 1>}, {transform_indices = @transform_2, window_bounds = array<i64: 10, 1, 128>}, {transform_indices = @transform_3, window_bounds = array<i64: 1, 128>}]} {
    %c0 = arith.constant 0 : index
    %0 = memref.load %arg2[%c0] : memref<1xf32, #tpu.memory_space<smem>>
    %1 = vector.broadcast %0 : f32 to vector<1x128xf32>
    %c0_0 = arith.constant 0 : index
    %2 = memref.load %arg1[%c0_0] : memref<10xf32, #tpu.memory_space<smem>>
    %c0_1 = arith.constant 0 : index
    %c0_2 = arith.constant 0 : index
    %c0_3 = arith.constant 0 : index
    %3 = vector.load %arg3[%c0_1, %c0_2, %c0_3] : memref<10x1x128xf32, #tpu.memory_space<vmem>>, vector<1x1x128xf32>
    %4 = vector.shape_cast %3 : vector<1x1x128xf32> to vector<1x128xf32>
    %5 = vector.broadcast %2 : f32 to vector<1x128xf32>
    %6 = arith.mulf %5, %4 : vector<1x128xf32>
    %7 = arith.addf %1, %6 : vector<1x128xf32>
    %c1 = arith.constant 1 : index
    %8 = memref.load %arg1[%c1] : memref<10xf32, #tpu.memory_space<smem>>
    %c1_4 = arith.constant 1 : index
    %c0_5 = arith.constant 0 : index
    %c0_6 = arith.constant 0 : index
    %9 = vector.load %arg3[%c1_4, %c0_5, %c0_6] : memref<10x1x128xf32, #tpu.memory_space<vmem>>, vector<1x1x128xf32>
    %10 = vector.shape_cast %9 : vector<1x1x128xf32> to vector<1x128xf32>
    %11 = vector.broadcast %8 : f32 to vector<1x128xf32>
    %12 = arith.mulf %11, %10 : vector<1x128xf32>
    %13 = arith.addf %7, %12 : vector<1x128xf32>
    %c2 = arith.constant 2 : index
    %14 = memref.load %arg1[%c2] : memref<10xf32, #tpu.memory_space<smem>>
    %c2_7 = arith.constant 2 : index
    %c0_8 = arith.constant 0 : index
    %c0_9 = arith.constant 0 : index
    %15 = vector.load %arg3[%c2_7, %c0_8, %c0_9] : memref<10x1x128xf32, #tpu.memory_space<vmem>>, vector<1x1x128xf32>
    %16 = vector.shape_cast %15 : vector<1x1x128xf32> to vector<1x128xf32>
    %17 = vector.broadcast %14 : f32 to vector<1x128xf32>
    %18 = arith.mulf %17, %16 : vector<1x128xf32>
    %19 = arith.addf %13, %18 : vector<1x128xf32>
    %c3 = arith.constant 3 : index
    %20 = memref.load %arg1[%c3] : memref<10xf32, #tpu.memory_space<smem>>
    %c3_10 = arith.constant 3 : index
    %c0_11 = arith.constant 0 : index
    %c0_12 = arith.constant 0 : index
    %21 = vector.load %arg3[%c3_10, %c0_11, %c0_12] : memref<10x1x128xf32, #tpu.memory_space<vmem>>, vector<1x1x128xf32>
    %22 = vector.shape_cast %21 : vector<1x1x128xf32> to vector<1x128xf32>
    %23 = vector.broadcast %20 : f32 to vector<1x128xf32>
    %24 = arith.mulf %23, %22 : vector<1x128xf32>
    %25 = arith.addf %19, %24 : vector<1x128xf32>
    %c4 = arith.constant 4 : index
    %26 = memref.load %arg1[%c4] : memref<10xf32, #tpu.memory_space<smem>>
    %c4_13 = arith.constant 4 : index
    %c0_14 = arith.constant 0 : index
    %c0_15 = arith.constant 0 : index
    %27 = vector.load %arg3[%c4_13, %c0_14, %c0_15] : memref<10x1x128xf32, #tpu.memory_space<vmem>>, vector<1x1x128xf32>
    %28 = vector.shape_cast %27 : vector<1x1x128xf32> to vector<1x128xf32>
    %29 = vector.broadcast %26 : f32 to vector<1x128xf32>
    %30 = arith.mulf %29, %28 : vector<1x128xf32>
    %31 = arith.addf %25, %30 : vector<1x128xf32>
    %c5 = arith.constant 5 : index
    %32 = memref.load %arg1[%c5] : memref<10xf32, #tpu.memory_space<smem>>
    %c5_16 = arith.constant 5 : index
    %c0_17 = arith.constant 0 : index
    %c0_18 = arith.constant 0 : index
    %33 = vector.load %arg3[%c5_16, %c0_17, %c0_18] : memref<10x1x128xf32, #tpu.memory_space<vmem>>, vector<1x1x128xf32>
    %34 = vector.shape_cast %33 : vector<1x1x128xf32> to vector<1x128xf32>
    %35 = vector.broadcast %32 : f32 to vector<1x128xf32>
    %36 = arith.mulf %35, %34 : vector<1x128xf32>
    %37 = arith.addf %31, %36 : vector<1x128xf32>
    %c6 = arith.constant 6 : index
    %38 = memref.load %arg1[%c6] : memref<10xf32, #tpu.memory_space<smem>>
    %c6_19 = arith.constant 6 : index
    %c0_20 = arith.constant 0 : index
    %c0_21 = arith.constant 0 : index
    %39 = vector.load %arg3[%c6_19, %c0_20, %c0_21] : memref<10x1x128xf32, #tpu.memory_space<vmem>>, vector<1x1x128xf32>
    %40 = vector.shape_cast %39 : vector<1x1x128xf32> to vector<1x128xf32>
    %41 = vector.broadcast %38 : f32 to vector<1x128xf32>
    %42 = arith.mulf %41, %40 : vector<1x128xf32>
    %43 = arith.addf %37, %42 : vector<1x128xf32>
    %c7 = arith.constant 7 : index
    %44 = memref.load %arg1[%c7] : memref<10xf32, #tpu.memory_space<smem>>
    %c7_22 = arith.constant 7 : index
    %c0_23 = arith.constant 0 : index
    %c0_24 = arith.constant 0 : index
    %45 = vector.load %arg3[%c7_22, %c0_23, %c0_24] : memref<10x1x128xf32, #tpu.memory_space<vmem>>, vector<1x1x128xf32>
    %46 = vector.shape_cast %45 : vector<1x1x128xf32> to vector<1x128xf32>
    %47 = vector.broadcast %44 : f32 to vector<1x128xf32>
    %48 = arith.mulf %47, %46 : vector<1x128xf32>
    %49 = arith.addf %43, %48 : vector<1x128xf32>
    %c8 = arith.constant 8 : index
    %50 = memref.load %arg1[%c8] : memref<10xf32, #tpu.memory_space<smem>>
    %c8_25 = arith.constant 8 : index
    %c0_26 = arith.constant 0 : index
    %c0_27 = arith.constant 0 : index
    %51 = vector.load %arg3[%c8_25, %c0_26, %c0_27] : memref<10x1x128xf32, #tpu.memory_space<vmem>>, vector<1x1x128xf32>
    %52 = vector.shape_cast %51 : vector<1x1x128xf32> to vector<1x128xf32>
    %53 = vector.broadcast %50 : f32 to vector<1x128xf32>
    %54 = arith.mulf %53, %52 : vector<1x128xf32>
    %55 = arith.addf %49, %54 : vector<1x128xf32>
    %c9 = arith.constant 9 : index
    %56 = memref.load %arg1[%c9] : memref<10xf32, #tpu.memory_space<smem>>
    %c9_28 = arith.constant 9 : index
    %c0_29 = arith.constant 0 : index
    %c0_30 = arith.constant 0 : index
    %57 = vector.load %arg3[%c9_28, %c0_29, %c0_30] : memref<10x1x128xf32, #tpu.memory_space<vmem>>, vector<1x1x128xf32>
    %58 = vector.shape_cast %57 : vector<1x1x128xf32> to vector<1x128xf32>
    %59 = vector.broadcast %56 : f32 to vector<1x128xf32>
    %60 = arith.mulf %59, %58 : vector<1x128xf32>
    %61 = arith.addf %55, %60 : vector<1x128xf32>
    %c0_31 = arith.constant 0 : index
    %c0_32 = arith.constant 0 : index
    %62 = vector.load %arg4[%c0_31, %c0_32] : memref<1x128xf32, #tpu.memory_space<vmem>>, vector<1x128xf32>
    tpu.vector_store %arg4[%c0_31, %c0_32], %61 {strides = array<i32>} : memref<1x128xf32, #tpu.memory_space<vmem>>, vector<1x128xf32>,
    return
  }
  func.func @transform_0(%arg0: i32) -> i32 {
    %c0_i32 = arith.constant 0 : i32
    %c0_i32_0 = arith.constant 0 : i32
    return %c0_i32 : i32
  }
  func.func @transform_1(%arg0: i32) -> i32 {
    %c0_i32 = arith.constant 0 : i32
    %c0_i32_0 = arith.constant 0 : i32
    return %c0_i32 : i32
  }
  func.func @transform_2(%arg0: i32) -> (i32, i32, i32) {
    %c0_i32 = arith.constant 0 : i32
    %c0_i32_0 = arith.constant 0 : i32
    %c0_i32_1 = arith.constant 0 : i32
    return %c0_i32, %arg0, %c0_i32_0 : i32, i32, i32
  }
  func.func @transform_3(%arg0: i32) -> (i32, i32) {
    %c0_i32 = arith.constant 0 : i32
    %c0_i32_0 = arith.constant 0 : i32
    return %arg0, %c0_i32 : i32, i32
  }
}

</mosaic_0001>

<bundles_post_ra>
// kernel: simple_model_forward.1
= control target key start
LH: loop header
LB: loop body
LE: loop exit
PB: predicated region body
PF: predicated region fallthrough
CT: control target
= control target key end

     0   :  { %9 = vsyncpa [#allocation4], 0  ;;  %s188_s0 = inlined_call_operand.vmem [shape: f32[10], index: 0, kind: input, shape index: {}]   ;;  %s189_s1 = inlined_call_operand.<no memory space> [shape: f32[1], index: 1, kind: input, shape index: {}]   ;;  %s190_s2 = inlined_call_operand.vmem [shape: f32[10,1,128], index: 2, kind: input, shape index: {}]   ;;  %s191_s3 = inlined_call_operand.vmem [shape: f32[1,128], index: 3, kind: output, shape index: {}]  }
   0x1   :  { %s16_s14 = sshll.u32 %s188_s0, 4  ;;  %s17_s14 = int_to_ptr.vmem [resolvable:$true] %s16_s14 }
   0x2   :  { %s114_s15 = scalar_lea.vmem %s17_s14, 16  ;;  %p119_p1 = scmp.lt.s32.totalorder %s17_s14, %s17_s14 }
   0x3   :  { %p115_p0 = scmp.ne.s32.totalorder %s17_s14, %s114_s15  ;;  %p120_p2 = scmp.lt.s32.totalorder %s114_s15, %s114_s15 }
   0x5   :  { %p121_p3 = por %p120_p2, %p119_p1 }
   0x7   :  { %p122_p4 = pnand %p121_p3, %p115_p0 }
   0x9   :  { %125 = shalt.err (!%p122_p4)
}
   0xa   :  { %s128_s16 = smov [#allocation3]  }
   0xb   :  { %19 = dma.vmem_to_smem %s17_s14, 16, %s128_s16, [#allocation4]  }
   0xc   :  { %126 = dma.done.wait [#allocation4], 16  }
   0xd   :  { %127 = vsyncadd [#allocation4], 4294967280 }
   0xe   :  { %27 = sfence }
   0xf   :  { %s30_s17 = sld [smem:[#allocation3]]  ;;  %v31_v0 = vld [vmem:[%s190_s2] sm:$0x1]  ;;  %v96_v1 = vld [vmem:[%s190_s2 + $0x1] sm:$0x1]  ;;  %v29_v2 = vstv %s189_s1 }
  0x10   :  { %s95_s18 = sld [smem:[#allocation3 + $0x1]]  ;;  %v98_v4 = vld [vmem:[%s190_s2 + $0x2] sm:$0x1]  ;;  %v100_v9 = vld [vmem:[%s190_s2 + $0x3] sm:$0x1] }
  0x11   :  { %s97_s19 = sld [smem:[#allocation3 + $0x2]]  ;;  %v102_v13 = vld [vmem:[%s190_s2 + $0x4] sm:$0x1]  ;;  %v104_v17 = vld [vmem:[%s190_s2 + $0x5] sm:$0x1] }
  0x12   :  { %s99_s20 = sld [smem:[#allocation3 + $0x3]]  ;;  %v106_v21 = vld [vmem:[%s190_s2 + $0x6] sm:$0x1]  ;;  %v108_v25 = vld [vmem:[%s190_s2 + $0x7] sm:$0x1] }
  0x13   :  { %s101_s0 = sld [smem:[#allocation3 + $0x4]]  ;;  %v110_v29 = vld [vmem:[%s190_s2 + $0x8] sm:$0x1]  ;;  %v112_v33 = vld [vmem:[%s190_s2 + $0x9] sm:$0x1] }
  0x14   :  { %s103_s25 = sld [smem:[#allocation3 + $0x5]] }
  0x15   :  { %v32_v3 = vstv %s30_s17  ;;  %s105_s30 = sld [smem:[#allocation3 + $0x6]] }
  0x16   :  { %v33_v5 = vmul.f32 %v32_v3, %v31_v0  ;;  %v38_v6 = vstv %s95_s18  ;;  %s107_s6 = sld [smem:[#allocation3 + $0x7]] }
  0x17   :  { %v39_v7 = vmul.f32 %v96_v1, %v38_v6  ;;  %v44_v8 = vstv %s97_s19  ;;  %s109_s8 = sld [smem:[#allocation3 + $0x8]] }
  0x18   :  { %v34_v10 = vadd.f32 %v33_v5, %v29_v2  ;;  %v45_v11 = vmul.f32 %v98_v4, %v44_v8  ;;  %v50_v12 = vstv %s99_s20  ;;  %s111_s11 = sld [smem:[#allocation3 + $0x9]] }
  0x19   :  { %v56_v14 = vstv %s101_s0  ;;  %v51_v16 = vmul.f32 %v100_v9, %v50_v12 }
  0x1a   :  { %v40_v15 = vadd.f32 %v39_v7, %v34_v10  ;;  %v62_v18 = vstv %s103_s25  ;;  %v57_v20 = vmul.f32 %v102_v13, %v56_v14 }
  0x1b   :  { %v68_v22 = vstv %s105_s30  ;;  %v63_v24 = vmul.f32 %v104_v17, %v62_v18 }
  0x1c   :  { %v46_v19 = vadd.f32 %v45_v11, %v40_v15  ;;  %v74_v26 = vstv %s107_s6  ;;  %v69_v28 = vmul.f32 %v106_v21, %v68_v22 }
  0x1d   :  { %v80_v30 = vstv %s109_s8  ;;  %v75_v32 = vmul.f32 %v108_v25, %v74_v26 }
  0x1e   :  { %v52_v23 = vadd.f32 %v51_v16, %v46_v19  ;;  %v86_v34 = vstv %s111_s11  ;;  %v81_v36 = vmul.f32 %v110_v29, %v80_v30 }
  0x1f   :  { %v87_v38 = vmul.f32 %v112_v33, %v86_v34 }
  0x20   :  { %v58_v27 = vadd.f32 %v57_v20, %v52_v23 }
  0x22   :  { %v64_v31 = vadd.f32 %v63_v24, %v58_v27 }
  0x24   :  { %v70_v35 = vadd.f32 %v69_v28, %v64_v31 }
  0x26   :  { %v76_v37 = vadd.f32 %v75_v32, %v70_v35 }
  0x28   :  { %v82_v39 = vadd.f32 %v81_v36, %v76_v37 }
  0x2a   :  { %v88_v40 = vadd.f32 %v87_v38, %v82_v39 }
  0x2c   :  { %89 = vst [vmem:[%s191_s3] sm:$0x1] %v88_v40 }
  0x2d   :  { %94 = vsyncpa [#allocation4], 1 }

</bundles_post_ra>
